<compile_context>
chip_gen: v7x
topology: tpu7x:2x2x1
jax: 0.10.0
libtpu: 0.0.40
codegen_flags: <defaults>
</compile_context>

<pallas_src>
import jax
import jax.numpy as jnp
from jax.experimental import pallas as pl
from jax.experimental.pallas import tpu as pltpu


_KPAD = 8  # rank-3 low-pass basis zero-padded to one sublane tile


def _first_harmonic_coeff(seq_len: int) -> float:
    """Weight of the k=1 bin in the ortho irfft reconstruction (folded with the
    1/S from the combined ortho rfft+irfft scaling)."""
    if seq_len == 1:
        return 0.0              # only the DC bin exists
    if seq_len == 2:
        return 1.0 / seq_len    # k=1 is the Nyquist bin (no conjugate partner)
    return 2.0 / seq_len


def _freq_kernel(fwd_ref, rec_ref, prm_ref, x_ref, o_ref):
    # fwd_ref: (8, S)     rows [1; cos; sin; 0...]          (f32)
    # rec_ref: (S, 8)     cols [1/S; k1*cos; k1*sin; 0...]  (f32)
    # prm_ref: (4, H)     rows [1-beta^2; 1+beta^2; ln_weight; ln_bias]
    # x_ref  : (TB, S, H) input block
    tb, s, h = x_ref.shape
    # TODO(synk): on v6e/v7x with bf16 inputs, keep the elementwise math in
    # bf16 (f32 accumulation only); all-f32 kept here for v5e-safe numerics.
    x = x_ref[...].astype(jnp.float32)

    fwd = jnp.broadcast_to(fwd_ref[...][None], (tb, _KPAD, s))
    rec = jnp.broadcast_to(rec_ref[...][None], (tb, s, _KPAD))

    # Rank-3 projection along seq on the MXU: coeffs[b,k,h] = sum_s fwd[k,s]*x[b,s,h]
    coeffs = jnp.einsum('bks,bsh->bkh', fwd, x,
                        preferred_element_type=jnp.float32,
                        precision=jax.lax.Precision.HIGHEST)      # (TB, 8, H)
    # Fold (1 - beta^2) into the tiny coefficient tensor (not the big block).
    coeffs = coeffs * prm_ref[0][None, None, :]
    # Reconstruction on the MXU: (1 - beta^2) * low_pass
    low_s = jnp.einsum('bsk,bkh->bsh', rec, coeffs,
                       preferred_element_type=jnp.float32,
                       precision=jax.lax.Precision.HIGHEST)       # (TB, S, H)

    # z = (1-beta^2)*low + (1+beta^2)*x  (== low + beta^2*high + residual x)
    # TODO(synk): nn.Dropout is identity in eval mode; no RNG applied here.
    z = low_s + prm_ref[1][None, None, :] * x

    # LayerNorm over hidden, eps=1e-12, two-pass variance.
    inv_h = 1.0 / h
    mean = jnp.sum(z, axis=-1, keepdims=True) * inv_h
    d = z - mean
    var = jnp.sum(d * d, axis=-1, keepdims=True) * inv_h
    normed = d * jax.lax.rsqrt(var + 1e-12)
    out = normed * prm_ref[2][None, None, :] + prm_ref[3][None, None, :]
    o_ref[...] = out.astype(o_ref.dtype)


def _pick_batch_block(batch, seq_len, hidden, itemsize,
                      target_bytes=2 << 20, min_grid_steps=2):
    """Batch rows per grid step: ~2 MiB per block (>=1 MiB tiles already reach
    ~85% of HBM roofline) while keeping >= min_grid_steps grid steps so the
    parallel grid axis can be sharded across TensorCores (v7x) and pipelined.
    No divisibility constraint: partial last blocks are masked by Pallas."""
    per_row = max(1, seq_len * hidden * itemsize)
    cap = max(1, target_bytes // per_row)
    cap = min(cap, max(1, pl.cdiv(batch, min_grid_steps)))
    return int(max(1, min(batch, cap)))


def frequency_layer(x, sqrt_beta, ln_weight, ln_bias, *, batch_block=None):
    """x: (B, S, H); sqrt_beta: (1, 1, H); ln_weight/ln_bias: (H,)."""
    B, S, H = x.shape
    dt = x.dtype
    itemsize = jnp.dtype(dt).itemsize

    # Closed-form rank-3 factors of the 2-frequency ortho low-pass.
    theta = (2.0 * jnp.pi / S) * jnp.arange(S, dtype=jnp.float32)
    cos_t, sin_t = jnp.cos(theta), jnp.sin(theta)
    k1 = _first_harmonic_coeff(S)
    pad = jnp.zeros((_KPAD - 3, S), jnp.float32)
    fwd = jnp.concatenate([jnp.ones((1, S), jnp.float32),
                           cos_t[None], sin_t[None], pad], axis=0)        # (8, S)
    rec = jnp.concatenate([jnp.full((1, S), 1.0 / S, jnp.float32),
                           (k1 * cos_t)[None], (k1 * sin_t)[None], pad],
                          axis=0).T                                        # (S, 8)

    b2 = jnp.square(sqrt_beta.reshape(H).astype(jnp.float32))
    params = jnp.stack([1.0 - b2, 1.0 + b2,
                        ln_weight.reshape(H).astype(jnp.float32),
                        ln_bias.reshape(H).astype(jnp.float32)], axis=0)   # (4, H)

    TB = batch_block if batch_block is not None else _pick_batch_block(
        B, S, H, itemsize)
    TB = int(max(1, min(TB, B)))
    grid = (pl.cdiv(B, TB),)   # partial last block handled by Pallas masking

    cost = pl.CostEstimate(
        flops=int((4 * _KPAD + 12) * B * S * H),
        transcendentals=int(B * S),                 # one rsqrt per (batch, seq)
        bytes_accessed=int(2 * B * S * H * itemsize))

    return pl.pallas_call(
        _freq_kernel,
        out_shape=jax.ShapeDtypeStruct((B, S, H), dt),
        grid_spec=pltpu.PrefetchScalarGridSpec(
            num_scalar_prefetch=0,
            grid=grid,
            in_specs=[pl.BlockSpec((_KPAD, S), lambda b: (0, 0)),
                      pl.BlockSpec((S, _KPAD), lambda b: (0, 0)),
                      pl.BlockSpec((4, H), lambda b: (0, 0)),
                      pl.BlockSpec((TB, S, H), lambda b: (b, 0, 0))],
            out_specs=pl.BlockSpec((TB, S, H), lambda b: (b, 0, 0))),
        compiler_params=pltpu.CompilerParams(
            dimension_semantics=("parallel",),
            vmem_limit_bytes=48 << 20),
        cost_estimate=cost,
    )(fwd, rec, params, x)


def _reference(x, sqrt_beta, ln_weight, ln_bias):
    """Pure-JAX reference mirroring the PyTorch forward (FFT-based)."""
    B, S, H = x.shape
    x32 = x.astype(jnp.float32)
    xf = jnp.fft.rfft(x32, axis=1, norm="ortho")
    xf = xf.at[:, 2:, :].set(0.0)
    low = jnp.fft.irfft(xf, n=S, axis=1, norm="ortho")
    high = x32 - low
    y = low + jnp.square(sqrt_beta.astype(jnp.float32)) * high
    z = y + x32
    mean = jnp.mean(z, axis=-1, keepdims=True)
    var = jnp.mean((z - mean) ** 2, axis=-1, keepdims=True)
    normed = (z - mean) / jnp.sqrt(var + 1e-12)
    return (normed * ln_weight + ln_bias).astype(x.dtype)


if __name__ == "__main__":
    B, S, H = 2, 8, 32
    key = jax.random.PRNGKey(0)
    kx, kb = jax.random.split(key)

    x = jax.random.normal(kx, (B, S, H), dtype=jnp.float32)
    sqrt_beta = jax.random.normal(kb, (1, 1, H), dtype=jnp.float32)  # torch.randn init
    ln_weight = jnp.ones((H,), dtype=jnp.float32)                    # LayerNorm defaults
    ln_bias = jnp.zeros((H,), dtype=jnp.float32)

    out = frequency_layer(x, sqrt_beta, ln_weight, ln_bias)
    out = jax.block_until_ready(out)

    ref = _reference(x, sqrt_beta, ln_weight, ln_bias)
    assert out.shape == (B, S, H)
    assert jnp.allclose(out, ref, atol=2e-4, rtol=2e-4), "mismatch vs reference"

    print("KERNEL_OK")
</pallas_src>

<mosaic_0001>
module attributes {stable_mosaic.version = 11 : i64} {
  func.func @_freq_kernel(%arg0: i32, %arg1: memref<8x8xf32, #tpu.memory_space<vmem>>, %arg2: memref<8x8xf32, #tpu.memory_space<vmem>>, %arg3: memref<4x32xf32, #tpu.memory_space<vmem>>, %arg4: memref<1x8x32xf32, #tpu.memory_space<vmem>>, %arg5: memref<1x8x32xf32, #tpu.memory_space<vmem>>) attributes {dimension_semantics = [#tpu.dimension_semantics<parallel>], iteration_bounds = array<i64: 2>, scalar_prefetch = 0 : i64, scratch_operands = 0 : i64, tpu.core_type = #tpu.core_type<tc>, window_params = [{pipeline_mode = #tpu.pipeline_mode<synchronous>, transform_indices = @transform_0, window_bounds = array<i64: 8, 8>}, {pipeline_mode = #tpu.pipeline_mode<synchronous>, transform_indices = @transform_1, window_bounds = array<i64: 8, 8>}, {pipeline_mode = #tpu.pipeline_mode<synchronous>, transform_indices = @transform_2, window_bounds = array<i64: 4, 32>}, {transform_indices = @transform_3, window_bounds = array<i64: 1, 8, 32>}, {transform_indices = @transform_4, window_bounds = array<i64: 1, 8, 32>}]} {
    %c0 = arith.constant 0 : index
    %c0_0 = arith.constant 0 : index
    %c0_1 = arith.constant 0 : index
    %0 = vector.load %arg4[%c0, %c0_0, %c0_1] : memref<1x8x32xf32, #tpu.memory_space<vmem>>, vector<1x8x32xf32>
    %c0_2 = arith.constant 0 : index
    %c0_3 = arith.constant 0 : index
    %1 = vector.load %arg1[%c0_2, %c0_3] : memref<8x8xf32, #tpu.memory_space<vmem>>, vector<8x8xf32>
    %2 = vector.shape_cast %1 : vector<8x8xf32> to vector<1x8x8xf32>
    %c0_4 = arith.constant 0 : index
    %c0_5 = arith.constant 0 : index
    %3 = vector.load %arg2[%c0_4, %c0_5] : memref<8x8xf32, #tpu.memory_space<vmem>>, vector<8x8xf32>
    %4 = vector.shape_cast %3 : vector<8x8xf32> to vector<1x8x8xf32>
    "tpu.trace_start"() <{level = 10 : i32, message = "bks,bsh->bkh"}> : () -> ()
    %cst = arith.constant dense<0.000000e+00> : vector<1x8x32xf32>
    %5 = tpu.matmul %2, %0, %cst {dimension_numbers = #tpu.dot_dimension_numbers<[2], [1], [1], [2], [0, 0, 0, 1, 1, 2], [0], [0]>, precision = #tpu.contract_precision<fp32>} : vector<1x8x8xf32>, vector<1x8x32xf32>, vector<1x8x32xf32> -> vector<1x8x32xf32>
    "tpu.trace_stop"() : () -> ()
    %c0_6 = arith.constant 0 : index
    %c0_7 = arith.constant 0 : index
    %6 = vector.load %arg3[%c0_6, %c0_7] : memref<4x32xf32, #tpu.memory_space<vmem>>, vector<1x32xf32>
    %7 = vector.shape_cast %6 : vector<1x32xf32> to vector<32xf32>
    %8 = vector.shape_cast %7 : vector<32xf32> to vector<1x1x32xf32>
    %9 = vector.broadcast %8 : vector<1x1x32xf32> to vector<1x8x32xf32>
    %10 = arith.mulf %5, %9 : vector<1x8x32xf32>
    "tpu.trace_start"() <{level = 10 : i32, message = "bsk,bkh->bsh"}> : () -> ()
    %cst_8 = arith.constant dense<0.000000e+00> : vector<1x8x32xf32>
    %11 = tpu.matmul %4, %10, %cst_8 {dimension_numbers = #tpu.dot_dimension_numbers<[2], [1], [1], [2], [0, 0, 0, 1, 1, 2], [0], [0]>, precision = #tpu.contract_precision<fp32>} : vector<1x8x8xf32>, vector<1x8x32xf32>, vector<1x8x32xf32> -> vector<1x8x32xf32>
    "tpu.trace_stop"() : () -> ()
    %c1 = arith.constant 1 : index
    %c0_9 = arith.constant 0 : index
    %12 = vector.load %arg3[%c1, %c0_9] : memref<4x32xf32, #tpu.memory_space<vmem>>, vector<1x32xf32>
    %13 = vector.shape_cast %12 : vector<1x32xf32> to vector<32xf32>
    %14 = vector.shape_cast %13 : vector<32xf32> to vector<1x1x32xf32>
    %15 = vector.broadcast %14 : vector<1x1x32xf32> to vector<1x8x32xf32>
    %16 = arith.mulf %15, %0 : vector<1x8x32xf32>
    %17 = arith.addf %11, %16 : vector<1x8x32xf32>
    %cst_10 = arith.constant dense<0.000000e+00> : vector<1x8xf32>
    %18 = vector.multi_reduction <add>, %17, %cst_10 [2] : vector<1x8x32xf32> to vector<1x8xf32>
    %19 = vector.shape_cast %18 : vector<1x8xf32> to vector<1x8x1xf32>
    %cst_11 = arith.constant 3.125000e-02 : f32
    %20 = vector.broadcast %cst_11 : f32 to vector<1x8x1xf32>
    %21 = arith.mulf %19, %20 : vector<1x8x1xf32>
    %22 = vector.broadcast %21 : vector<1x8x1xf32> to vector<1x8x32xf32>
    %23 = arith.subf %17, %22 : vector<1x8x32xf32>
    %24 = arith.mulf %23, %23 : vector<1x8x32xf32>
    %cst_12 = arith.constant dense<0.000000e+00> : vector<1x8xf32>
    %25 = vector.multi_reduction <add>, %24, %cst_12 [2] : vector<1x8x32xf32> to vector<1x8xf32>
    %26 = vector.shape_cast %25 : vector<1x8xf32> to vector<1x8x1xf32>
    %cst_13 = arith.constant 3.125000e-02 : f32
    %27 = vector.broadcast %cst_13 : f32 to vector<1x8x1xf32>
    %28 = arith.mulf %26, %27 : vector<1x8x1xf32>
    %cst_14 = arith.constant 9.99999996E-13 : f32
    %29 = vector.broadcast %cst_14 : f32 to vector<1x8x1xf32>
    %30 = arith.addf %28, %29 : vector<1x8x1xf32>
    %31 = math.rsqrt %30 : vector<1x8x1xf32>
    %32 = vector.broadcast %31 : vector<1x8x1xf32> to vector<1x8x32xf32>
    %33 = arith.mulf %23, %32 : vector<1x8x32xf32>
    %c2 = arith.constant 2 : index
    %c0_15 = arith.constant 0 : index
    %34 = vector.load %arg3[%c2, %c0_15] : memref<4x32xf32, #tpu.memory_space<vmem>>, vector<1x32xf32>
    %35 = vector.shape_cast %34 : vector<1x32xf32> to vector<32xf32>
    %36 = vector.shape_cast %35 : vector<32xf32> to vector<1x1x32xf32>
    %37 = vector.broadcast %36 : vector<1x1x32xf32> to vector<1x8x32xf32>
    %38 = arith.mulf %33, %37 : vector<1x8x32xf32>
    %c3 = arith.constant 3 : index
    %c0_16 = arith.constant 0 : index
    %39 = vector.load %arg3[%c3, %c0_16] : memref<4x32xf32, #tpu.memory_space<vmem>>, vector<1x32xf32>
    %40 = vector.shape_cast %39 : vector<1x32xf32> to vector<32xf32>
    %41 = vector.shape_cast %40 : vector<32xf32> to vector<1x1x32xf32>
    %42 = vector.broadcast %41 : vector<1x1x32xf32> to vector<1x8x32xf32>
    %43 = arith.addf %38, %42 : vector<1x8x32xf32>
    %c0_17 = arith.constant 0 : index
    %c0_18 = arith.constant 0 : index
    %c0_19 = arith.constant 0 : index
    %44 = vector.load %arg5[%c0_17, %c0_18, %c0_19] : memref<1x8x32xf32, #tpu.memory_space<vmem>>, vector<1x8x32xf32>
    tpu.vector_store %arg5[%c0_17, %c0_18, %c0_19], %43 {strides = array<i32>} : memref<1x8x32xf32, #tpu.memory_space<vmem>>, vector<1x8x32xf32>,
    return
  }
  func.func @transform_0(%arg0: i32) -> (i32, i32) {
    %c0_i32 = arith.constant 0 : i32
    %c0_i32_0 = arith.constant 0 : i32
    %c0_i32_1 = arith.constant 0 : i32
    return %c0_i32, %c0_i32_0 : i32, i32
  }
  func.func @transform_1(%arg0: i32) -> (i32, i32) {
    %c0_i32 = arith.constant 0 : i32
    %c0_i32_0 = arith.constant 0 : i32
    %c0_i32_1 = arith.constant 0 : i32
    return %c0_i32, %c0_i32_0 : i32, i32
  }
  func.func @transform_2(%arg0: i32) -> (i32, i32) {
    %c0_i32 = arith.constant 0 : i32
    %c0_i32_0 = arith.constant 0 : i32
    %c0_i32_1 = arith.constant 0 : i32
    return %c0_i32, %c0_i32_0 : i32, i32
  }
  func.func @transform_3(%arg0: i32) -> (i32, i32, i32) {
    %c0_i32 = arith.constant 0 : i32
    %c0_i32_0 = arith.constant 0 : i32
    %c0_i32_1 = arith.constant 0 : i32
    return %arg0, %c0_i32, %c0_i32_0 : i32, i32, i32
  }
  func.func @transform_4(%arg0: i32) -> (i32, i32, i32) {
    %c0_i32 = arith.constant 0 : i32
    %c0_i32_0 = arith.constant 0 : i32
    %c0_i32_1 = arith.constant 0 : i32
    return %arg0, %c0_i32, %c0_i32_0 : i32, i32, i32
  }
}

</mosaic_0001>

<bundles_post_ra>
// kernel: tpu_custom_call.1
= control target key start
LH: loop header
LB: loop body
LE: loop exit
PB: predicated region body
PF: predicated region fallthrough
CT: control target
= control target key end

     0   :  { %9 = vsyncpa [#allocation3], 0  ;;  %s1961_s0 = inlined_call_operand.hbm [shape: f32[8,8], index: 0, kind: input, shape index: {}]   ;;  %s1962_s1 = inlined_call_operand.hbm [shape: f32[8,8], index: 1, kind: input, shape index: {}]   ;;  %s1963_s2 = inlined_call_operand.vmem [shape: f32[4,32], index: 2, kind: input, shape index: {}]   ;;  %s1964_s3 = inlined_call_operand.hbm [shape: f32[2,8,32], index: 3, kind: input, shape index: {}]   ;;  %s1965_s4 = inlined_call_operand.hbm [shape: f32[2,8,32], index: 4, kind: output, shape index: {}]  }
   0x1   :  { %10 = vsyncpa [#allocation6], 0 }
   0x2   :  { %11 = vsyncpa [#allocation4], 0 }
   0x3   :  { %13 = vsyncpa [#allocation4 + $0x1], 0  ;;  %s1669_s15 = smov 0   ;;  %s1671_s16 = smov 0  }
   0x4   :  { %s1673_s17 = smov 0   ;;  %s1675_s18 = smov 0  }
   0x5 LB: > { %s1690_s19 = sadd.s32 4294967295, %s1636_s18   ;;  %s1280_s20 = sadd.s32 4294967294, %s1636_s18   ;;  %s1636_s18 = sphi %s1675_s18, %s1987_s18   ;;  %s1632_s17 = sphi %s1673_s17, %s1986_s17   ;;  %s1628_s16 = sphi %s1671_s16, %s1985_s16   ;;  %s1624_s15 = sphi %s1669_s15, %s1984_s15  }
   0x6   : > { %p102_p0 = scmp.ne.s32.totalorder %s1628_s16, %s1624_s15  ;;  %p1966_p1 = scmp.eq.s32.totalorder %s1690_s19, 0 }
   0x7   : > { %p132_p3 = scmp.eq.s32.totalorder %s1280_s20, 1  ;;  %p1281_p5 = scmp.ge.s32.totalorder %s1636_s18, 1 }
   0x8   : > { %p1699_p4 = por %p1966_p1, %p102_p0  ;;  %p139_p7 = scmp.lt.s32.totalorder %s1636_s18, 3 }
   0x9   : > { %p1704_p6 = por %p132_p3, %p102_p0  ;;  %s1638_s24 = smov [#allocation2]  }
   0xa   : > { %s1969_s21 = scalar_select %p1699_p4, 1, 0 }
   0xb   : > { %s1970_s22 = scalar_select %p1704_p6, 1, 0 }
   0xc   : > { %p1709_p8 = pnand %p1281_p5, %p139_p7  ;;  %s152_s25 = sshll.u32 %s1638_s24, 4  ;;  %s153_s25 = int_to_ptr.vmem [resolvable:$true] %s152_s25 }
   0xd   : > { %s1639_s26 = smov [#allocation5]   ;;  %s1725_s29 = sadd.s32 1, %s1636_s18  }
   0xe   : > { %s1971_s23 = scalar_select %p1709_p8, 1, 0 }
   0xf   : > { %p1417_p10 = pneg %p1709_p8  ;;  %s163_s27 = sshll.u32 %s1639_s26, 4  ;;  %s1722_s27 = int_to_ptr.vmem [resolvable:$true] %s163_s27 }
  0x10   : > { %s86_s30 = ssub.s32 %s1636_s18, %s1725_s29  ;;  %s1476_s7 = scalar_lea.hbm %s1961_s0, 128 }
  0x11   : > { %p1718_p11 = pnand %p1417_p10, %p1966_p1  ;;  %p1477_p12 = scmp.ne.s32.totalorder %s1961_s0, %s1476_s7 }
  0x12   : > { %p1483_p5 = scmp.lt.u32.totalorder %s1476_s7, %s1961_s0 }
  0x13   : > { %p1478_p13 = pneg %p1718_p11 }
  0x15   : > { %p1479_p0 = pnand %p1478_p13, %p1477_p12 }
  0x17   : > { %p1480_p3 = pneg %p1479_p0 }
  0x19   : > { %p1485_p7 = pnand %p1483_p5, %p1480_p3 }
  0x1b   : > { %1488 = shalt.err (!%p1485_p7)
}
  0x1c   : > { %s1489_s12 = scalar_lea.vmem %s153_s25, 128  ;;  %p1497_p2 = scmp.lt.s32.totalorder %s153_s25, %s153_s25 }
  0x1d   : > { %p1490_p10 = scmp.ne.s32.totalorder %s153_s25, %s1489_s12  ;;  %p1498_p6 = scmp.lt.s32.totalorder %s1489_s12, %s1489_s12 }
  0x1f   : > { %p1492_p9 = pnand %p1490_p10, %p1478_p13  ;;  %p1499_p4 = por %p1498_p6, %p1497_p2 }
  0x21   : > { %p1493_p1 = pneg %p1492_p9 }
  0x23   : > { %p1500_p8 = pnand %p1499_p4, %p1493_p1 }
  0x25   : > { %1503 = shalt.err (!%p1500_p8)
}
  0x26   : > { %1420 = dma.hbm_to_vmem [thread:$0]  (!%p1718_p11), %s1961_s0, 128, %s153_s25, [#allocation3]  }
  0x27   : > { %s1504_s26 = scalar_lea.hbm %s1962_s1, 128 }
  0x28   : > { %p1505_p9 = scmp.ne.s32.totalorder %s1962_s1, %s1504_s26  ;;  %p1511_p4 = scmp.lt.u32.totalorder %s1504_s26, %s1962_s1 }
  0x2a   : > { %p1507_p2 = pnand %p1505_p9, %p1478_p13 }
  0x2c   : > { %p1508_p1 = pneg %p1507_p2 }
  0x2e   : > { %p1513_p6 = pnand %p1511_p4, %p1508_p1 }
  0x30   : > { %1516 = shalt.err (!%p1513_p6)
}
  0x31   : > { %s1517_s25 = scalar_lea.vmem %s1722_s27, 128  ;;  %p1525_p3 = scmp.lt.s32.totalorder %s1722_s27, %s1722_s27 }
  0x32   : > { %p1518_p8 = scmp.ne.s32.totalorder %s1722_s27, %s1517_s25  ;;  %p1526_p5 = scmp.lt.s32.totalorder %s1517_s25, %s1517_s25 }
  0x34   : > { %p1520_p12 = pnand %p1518_p8, %p1478_p13  ;;  %p1527_p7 = por %p1526_p5, %p1525_p3 }
  0x36   : > { %p1521_p0 = pneg %p1520_p12 }
  0x38   : > { %p1528_p10 = pnand %p1527_p7, %p1521_p0 }
  0x3a   : > { %1531 = shalt.err (!%p1528_p10)
}
  0x3b   : > { %1423 = dma.hbm_to_vmem [thread:$0]  (!%p1718_p11), %s1962_s1, 128, %s1722_s27, [#allocation6]  }
  0x3c   : > { %p87_p13 = scmp.eq.s32.totalorder %s86_s30, 0  ;;  %s89_s28 = sadd.s32 1, %s1632_s17 }
  0x3d   : > { %p96_p9 = scmp.ne.s32.totalorder %s1632_s17, %s1628_s16  ;;  %p97_p2 = scmp.eq.s32.totalorder %s1636_s18, 0 }
  0x3e   : > { %s1784_s11 = scalar_select %p87_p13, %s1632_s17, %s89_s28  }
  0x3f   : > { %p98_p1 = por %p97_p2, %p96_p9  ;;  %p1973_p4 = scmp.eq.s32.totalorder %s1690_s19, 1 }
  0x40   : > { %p1434_p8 = scmp.lt.s32.totalorder %s1636_s18, 2  ;;  %s177_s13 = sand.u32 1, %s1636_s18  }
  0x41   : > { %p1788_p6 = por %p1973_p4, %p96_p9  ;;  %s179_s14 = sand.u32 1, %s1632_s17  }
  0x42   : > { %s1285_s20 = sshll.u32 %s179_s14, 3  ;;  %s1286_s24 = sshll.u32 %s1636_s18, 7 }
  0x43   : > { %s1799_s30 = scalar_lea.hbm %s1964_s3, %s1286_s24  ;;  %s181_s5 = scalar_lea.vmem [#allocation7], %s1285_s20 }
  0x44   : > { %s188_s6 = sshll.u32 %s181_s5, 4  ;;  %p1801_p11 = pnand %p1434_p8, %p98_p1  ;;  %s1805_s6 = int_to_ptr.vmem [resolvable:$true] %s188_s6 }
  0x45   : > { %s178_s8 = scalar_lea.sflag [#allocation3], %s177_s13  ;;  %s1532_s25 = scalar_lea.hbm %s1799_s30, 128 }
  0x46   : > { %p1533_p12 = scmp.ne.s32.totalorder %s1799_s30, %s1532_s25  ;;  %p1534_p0 = pneg %p1801_p11 }
  0x47   : > { %s1537_s28 = scalar_lea.hbm %s1964_s3, 256  ;;  %p1538_p7 = scmp.lt.u32.totalorder %s1799_s30, %s1964_s3 }
  0x48   : > { %p1535_p3 = pnand %p1534_p0, %p1533_p12  ;;  %p1539_p10 = scmp.lt.u32.totalorder %s1537_s28, %s1532_s25 }
  0x49   : > { %p1541_p9 = scmp.lt.u32.totalorder %s1532_s25, %s1799_s30 }
  0x4a   : > { %p1536_p5 = pneg %p1535_p3  ;;  %p1540_p13 = por %p1539_p10, %p1538_p7 }
  0x4c   : > { %p1542_p2 = por %p1541_p9, %p1540_p13 }
  0x4e   : > { %p1543_p1 = pnand %p1542_p2, %p1536_p5 }
  0x50   : > { %1546 = shalt.err (!%p1543_p1)
}
  0x51   : > { %s1547_s13 = scalar_lea.vmem %s1805_s6, 128  ;;  %s1640_s24 = smov [#allocation7]  }
  0x52   : > { %p1548_p4 = scmp.ne.s32.totalorder %s1805_s6, %s1547_s13  ;;  %s1552_s26 = sshll.u32 %s1640_s24, 4  ;;  %s1553_s26 = int_to_ptr.vmem [resolvable:$false] %s1552_s26 }
  0x53   : > { %s1554_s27 = scalar_lea.vmem %s1553_s26, 256  ;;  %p1555_p3 = scmp.lt.s32.totalorder %s1805_s6, %s1553_s26 }
  0x54   : > { %p1550_p8 = pnand %p1548_p4, %p1534_p0  ;;  %p1556_p7 = scmp.lt.s32.totalorder %s1554_s27, %s1547_s13 }
  0x56   : > { %p1551_p12 = pneg %p1550_p8  ;;  %p1557_p10 = por %p1556_p7, %p1555_p3 }
  0x58   : > { %p1558_p13 = pnand %p1557_p10, %p1551_p12 }
  0x5a   : > { %1561 = shalt.err (!%p1558_p13)
}
  0x5b   : > { %1427 = dma.hbm_to_vmem [thread:$0]  (!%p1801_p11), %s1799_s30, 128, %s1805_s6, %s178_s8  }
  0x5c   : > { %p1976_p5 = scmp.ne.s32.totalorder %s1971_s23, 0 }
  0x5d   : > { %p1977_p0 = scmp.eq.s32.totalorder (!%p1976_p5), %s1690_s19, 0 }
  0x5e   : > { %197 = sbr.rel (%p1976_p5) target bundleno = 960 (0x3c0), region = 36 }
  0x65   : > { %1607 = dma.done.wait (%p1977_p0), [#allocation3], 128   ;;  %p1978_p9 = pmov %p1977_p0 }
  0x66   : > { %p1979_p2 = pmov %p1977_p0 }
  0x67   : > { %1609 = vsyncadd (%p1978_p9), [#allocation3], 4294967168 }
  0x68   : > { %1611 = dma.done.wait (%p1979_p2), [#allocation6], 128   ;;  %p1980_p1 = pmov %p1977_p0 }
  0x69   : > { %s207_s30 = sand.u32 1, %s1690_s19   ;;  %s209_s5 = sand.u32 1, %s1628_s16  }
  0x6a   : > { %1613 = vsyncadd (%p1980_p1), [#allocation6], 4294967168  ;;  %s1846_s23 = sshll.u32 %s209_s5, 3  ;;  %s208_s6 = scalar_lea.sflag [#allocation3], %s207_s30 }
  0x6b   : > { %s211_s7 = scalar_lea.vmem [#allocation7], %s1846_s23  ;;  %p1981_p11 = scmp.ne.s32.totalorder %s1969_s21, 0 }
  0x6d   : > { %1615 = dma.done.wait (%p1981_p11), %s208_s6, 128  }
  0x6e   : > { %1617 = vsyncadd (%p1981_p11), %s208_s6, 4294967168  ;;  %v1641_v0 = vmov 0.0   ;;  %vm1642_vm0 = vmmov 0   ;;  %vm239_vm1 = vcmask 64512   ;;  %v1859_v1 = vld [vmem:[%s211_s7] sm:$0xff]  ;;  %v237_v2 = vld [vmem:[#allocation2] sm:$0xff] }
  0x6f   : > { %1324 = vmatprep.subr.mxu0 %v1641_v0  ;;  %1326 = vmatprep.mubr.msk.f32.mxu0 %vm1642_vm0, %v1641_v0  ;;  %v244_v3 = vand.u32 4294901760, %v1859_v1  ;;  %v241_v4 = vsel %vm239_vm1, %v237_v2, 0  ;;  %v238_v14 = vld [vmem:[#allocation5] sm:$0xff]  ;;  %v1292_v19 = vld [vmem:[%s1963_s2] ss:$0 sm:$0xff]  ;;  %vm1150_vm2 = vcmask 261120  }
  0x70   : > { %1354 = vmatprep.subr.mxu1 %v1641_v0  ;;  %1356 = vmatprep.mubr.msk.f32.mxu1 %vm1642_vm0, %v1641_v0  ;;  %v309_v5 = vand.u32 4294901760, %v241_v4  ;;  %v702_v15 = vsel %vm239_vm1, %v238_v14, 0  ;;  %v1293_v30 = vld [vmem:[%s1963_s2 + $0x1] ss:$0 sm:$0xff]  ;;  %v1294_v45 = vld [vmem:[%s1963_s2 + $0x2] ss:$0 sm:$0xff] }
  0x71   : > { %1325 = vmatpush3.msra.mxu0 %v244_v3  ;;  %v321_v6 = vsub.f32 %v1859_v1, %v244_v3  ;;  %v770_v16 = vand.u32 4294901760, %v702_v15  ;;  %v700_v31 = vmul.f32 %v1293_v30, %v1859_v1  ;;  %v1295_v47 = vld [vmem:[%s1963_s2 + $0x3] ss:$0 sm:$0xff]  ;;  %s1297_s13 = sshll.u32 %s1690_s19, 7  ;;  %s235_s24 = scalar_lea.vmem [#allocation8], %s1846_s23 }
  0x72   : > { %v310_v7 = vsub.f32 %v241_v4, %v309_v5  ;;  %1329 = vmatprep.subr.mxu0 %v1641_v0  ;;  %s1191_s26 = sshll.u32 %s235_s24, 4  ;;  %s1915_s6 = scalar_lea.hbm %s1965_s4, %s1297_s13  ;;  %s1917_s26 = int_to_ptr.vmem [resolvable:$true] %s1191_s26 }
  0x73   : > { %v322_v8 = vand.u32 4294901760, %v321_v6  ;;  %v771_v17 = vsub.f32 %v702_v15, %v770_v16  ;;  %s1178_s7 = scalar_lea.sflag [#allocation4], %s209_s5  ;;  %s1562_s21 = scalar_lea.vmem %s1917_s26, 128 }
  0x74   : > { %v311_v9 = vand.u32 4294901760, %v310_v7  ;;  %p1563_p4 = scmp.ne.s32.totalorder %s1917_s26, %s1562_s21  ;;  %s1643_s19 = smov [#allocation8]  }
  0x75   : > { %v323_v10 = vsub.f32 %v321_v6, %v322_v8  ;;  %v772_v18 = vand.u32 4294901760, %v771_v17  ;;  %s1566_s23 = sshll.u32 %s1643_s19, 4  ;;  %s1567_s23 = int_to_ptr.vmem [resolvable:$false] %s1566_s23 }
  0x76   : > { %v312_v11 = vsub.f32 %v310_v7, %v311_v9  ;;  %p1564_p8 = pnand %p1563_p4, %p1788_p6  ;;  %s1568_s8 = scalar_lea.vmem %s1567_s23, 256 }
  0x77   : > { %v324_v12 = vand.u32 4294901760, %v323_v10  ;;  %v773_v20 = vsub.f32 %v771_v17, %v772_v18  ;;  %p1569_p3 = scmp.lt.s32.totalorder %s1917_s26, %s1567_s23  ;;  %p1570_p7 = scmp.lt.s32.totalorder %s1568_s8, %s1562_s21 }
  0x78   : > { %v313_v13 = vand.u32 4294901760, %v312_v11  ;;  %p1565_p12 = pneg %p1564_p8 }
  0x79   : > { %v774_v24 = vand.u32 4294901760, %v773_v20  ;;  %p1571_p10 = por %p1570_p7, %p1569_p3 }
  0x7a   : > { %1327 = vmatmul.mubr.f32.vlgmr.msra.gmra.mrb[0].mxu0 %v313_v13 }
  0x7b   : > { %1330 = vmatpush3.msra.mxu0 %v324_v12  ;;  %1331 = vmatprep.mubr.msk.f32.mxu0 %vm1642_vm0, %v1641_v0  ;;  %p1572_p13 = pnand %p1571_p10, %p1565_p12 }
  0x7c   : > { %1334 = vmatprep.subr.mxu0 %v1641_v0 }
  0x82   : > { %1332 = vmatmul.mubr.f32.vlgmr.msra.gmra.mrb[0].mxu0 %v309_v5 }
  0x83   : > { %1335 = vmatpush3.msra.mxu0 %v321_v6  ;;  %1336 = vmatprep.mubr.msk.f32.mxu0 %vm1642_vm0, %v1641_v0 }
  0x84   : > { %1339 = vmatprep.subr.mxu0 %v1641_v0 }
  0x8a   : > { %1337 = vmatmul.mubr.f32.vlgmr.msra.gmra.mrb[0].mxu0 %v310_v7 }
  0x8b   : > { %1340 = vmatpush3.msra.mxu0 %v244_v3  ;;  %1341 = vmatprep.mubr.msk.f32.mxu0 %vm1642_vm0, %v1641_v0 }
  0x8c   : > { %1344 = vmatprep.subr.mxu0 %v1641_v0 }
  0x92   : > { %1342 = vmatmul.mubr.f32.vlgmr.msra.gmra.mrb[0].mxu0 %v311_v9 }
  0x93   : > { %1345 = vmatpush3.msra.mxu0 %v322_v8  ;;  %1346 = vmatprep.mubr.msk.f32.mxu0 %vm1642_vm0, %v1641_v0 }
  0x94   : > { %1349 = vmatprep.subr.mxu0 %v1641_v0 }
  0x9a   : > { %1347 = vmatmul.mubr.f32.vlgmr.msra.gmra.mrb[0].mxu0 %v309_v5 }
  0x9b   : > { %1350 = vmatpush3.msra.mxu0 %v244_v3  ;;  %1351 = vmatprep.mubr.msk.f32.mxu0 %vm1642_vm0, %v1641_v0 }
  0xa2   : > { %1352 = vmatmul.mubr.f32.vlgmr.msra.gmra.mrb[0].mxu0 %v309_v5 }
 0x175   : > { %v685_v21 = vpop.f32.mrb[0].mxu0 }
 0x176   : > { %v694_v22 = vmul.f32 %v1292_v19, %v685_v21  ;;  %v1353_v23 = vpop.f32.mrb[1].mxu0 }
 0x178   : > { %v705_v25 = vand.u32 4294901760, %v694_v22 }
 0x17a   : > { %v782_v26 = vsub.f32 %v694_v22, %v705_v25  ;;  %1355 = vmatpush3.msra.mxu1 %v705_v25 }
 0x17b   : > { %1357 = vmatmul.mubr.f32.vlgmr.msra.gmra.mrb[0].mxu1 %v774_v24  ;;  %1359 = vmatprep.subr.mxu1 %v1641_v0 }
 0x17c   : > { %v783_v27 = vand.u32 4294901760, %v782_v26  ;;  %1361 = vmatprep.mubr.msk.f32.mxu1 %vm1642_vm0, %v1641_v0 }
 0x17e   : > { %v784_v28 = vsub.f32 %v782_v26, %v783_v27 }
 0x180   : > { %v785_v29 = vand.u32 4294901760, %v784_v28 }
 0x182   : > { %1360 = vmatpush3.msra.mxu1 %v785_v29 }
 0x183   : > { %1362 = vmatmul.mubr.f32.vlgmr.msra.gmra.mrb[0].mxu1 %v770_v16  ;;  %1364 = vmatprep.subr.mxu1 %v1641_v0 }
 0x184   : > { %1365 = vmatpush3.msra.mxu1 %v782_v26  ;;  %1366 = vmatprep.mubr.msk.f32.mxu1 %vm1642_vm0, %v1641_v0 }
 0x185   : > { %1369 = vmatprep.subr.mxu1 %v1641_v0 }
 0x18b   : > { %1367 = vmatmul.mubr.f32.vlgmr.msra.gmra.mrb[0].mxu1 %v771_v17 }
 0x18c   : > { %1370 = vmatpush3.msra.mxu1 %v705_v25  ;;  %1371 = vmatprep.mubr.msk.f32.mxu1 %vm1642_vm0, %v1641_v0 }
 0x18d   : > { %1374 = vmatprep.subr.mxu1 %v1641_v0 }
 0x193   : > { %1372 = vmatmul.mubr.f32.vlgmr.msra.gmra.mrb[0].mxu1 %v772_v18 }
 0x194   : > { %1375 = vmatpush3.msra.mxu1 %v783_v27  ;;  %1376 = vmatprep.mubr.msk.f32.mxu1 %vm1642_vm0, %v1641_v0 }
 0x195   : > { %1379 = vmatprep.subr.mxu1 %v1641_v0 }
 0x19b   : > { %1377 = vmatmul.mubr.f32.vlgmr.msra.gmra.mrb[0].mxu1 %v770_v16 }
 0x19c   : > { %1380 = vmatpush3.msra.mxu1 %v705_v25  ;;  %1381 = vmatprep.mubr.msk.f32.mxu1 %vm1642_vm0, %v1641_v0 }
 0x1a3   : > { %1382 = vmatmul.mubr.f32.vlgmr.msra.gmra.mrb[0].mxu1 %v770_v16 }
 0x276   : > { %v1146_v32 = vpop.f32.mrb[0].mxu1 }
 0x277   : > { %v1384_v33 = vadd.f32 %v1146_v32, %v700_v31  ;;  %v1383_v34 = vpop.f32.mrb[1].mxu1 }
 0x279   : > { %v1151_v35 = vsel %vm1150_vm2, %v1384_v33, 0.0 }
 0x27a   : > { %1152 = vadd.xlane.f32.xlu0 %v1151_v35 }
 0x307   : > { %v1153_v36 = vpop.xlane.xlu0 %1152 }
 0x308   : > { %v1154_v37 = vmul.f32 0.03125, %v1153_v36 }
 0x30a   : > { %v1155_v38 = vsub.f32 %v1384_v33, %v1154_v37 }
 0x30c   : > { %v1156_v39 = vmul.f32 %v1155_v38, %v1155_v38 }
 0x30e   : > { %v1157_v40 = vsel %vm1150_vm2, %v1156_v39, 0.0 }
 0x30f   : > { %1158 = vadd.xlane.f32.xlu0 %v1157_v40 }
 0x39c   : > { %v1159_v41 = vpop.xlane.xlu0 %1158 }
 0x39d   : > { %v1160_v42 = vmul.f32 0.03125, %v1159_v41 }
 0x39f   : > { %v1161_v43 = vadd.f32 1e-12, %v1160_v42 }
 0x3a1   : > { %1474 = vrsqrt.f32 %v1161_v43 }
 0x3ab   : > { %v1475_v44 = vpop.eup %1474 }
 0x3ac   : > { %v1163_v46 = vmul.f32 %v1475_v44, %v1155_v38 }
 0x3ae   : > { %v1169_v48 = vmul.f32 %v1294_v45, %v1163_v46 }
 0x3b0   : > { %v1175_v49 = vadd.f32 %v1295_v47, %v1169_v48 }
 0x3b2   : > { %1176 = vst.msk [vmem:[%s235_s24] sm:$0xff] %vm1150_vm2, %v1175_v49 }
 0x3b3   : > { %1575 = shalt.err (!%p1572_p13)
}
 0x3b4   : > { %s1576_s5 = scalar_lea.hbm %s1915_s6, 128  ;;  %s1580_s10 = scalar_lea.hbm %s1965_s4, 256 }
 0x3b5   : > { %p1577_p5 = scmp.ne.s32.totalorder %s1915_s6, %s1576_s5  ;;  %p1581_p2 = scmp.lt.u32.totalorder %s1915_s6, %s1965_s4 }
 0x3b6   : > { %p1582_p1 = scmp.lt.u32.totalorder %s1580_s10, %s1576_s5  ;;  %p1584_p4 = scmp.lt.u32.totalorder %s1576_s5, %s1915_s6 }
 0x3b7   : > { %p1578_p0 = pnand %p1577_p5, %p1788_p6 }
 0x3b8   : > { %p1583_p11 = por %p1582_p1, %p1581_p2 }
 0x3b9   : > { %p1579_p9 = pneg %p1578_p0 }
 0x3ba   : > { %p1585_p8 = por %p1584_p4, %p1583_p11 }
 0x3bc   : > { %p1586_p12 = pnand %p1585_p8, %p1579_p9 }
 0x3be   : > { %1589 = shalt.err (!%p1586_p12)
}
 0x3bf   : > { %1415 = dma.vmem_to_hbm [thread:$0]  (%p1788_p6), %s1917_s26, 128, %s1915_s6, %s1178_s7  }
 0x3c0 PF: > { %s1203_s20 = sand.u32 1, %s1624_s15   ;;  %p1982_p3 = scmp.ne.s32.totalorder %s1970_s22, 0 }
 0x3c1   : > { %p1983_p7 = scmp.ge.s32.totalorder %s1636_s18, 2  ;;  %s1204_s13 = scalar_lea.sflag [#allocation4], %s1203_s20 }
 0x3c3   : > { %p1429_p10 = pnand %p1983_p7, %p1982_p3 }
 0x3c5   : > { %1619 = dma.done.wait (!%p1429_p10), %s1204_s13, 128  }
 0x3c6   : > { %1621 = vsyncadd (!%p1429_p10), %s1204_s13, 4294967168  ;;  %p16_p13 = scmp.ge.s32.totalorder %s1725_s29, 4   ;;  %s1984_s15 = smov %s1628_s16 }
 0x3c7   : > { %s1985_s16 = smov %s1632_s17  ;;  %s1986_s17 = smov %s1784_s11 }
 0x3c8   : > { %s1987_s18 = smov %s1725_s29  ;;  %18 = sbr.rel (!%p16_p13) target bundleno = 5 (0x5), region = 88 }
 0x3cf   :  { %1209 = vsyncpa [#allocation3], 1 }
 0x3d0   :  { %1211 = vsyncpa [#allocation3 + $0x1], 1 }
 0x3d1   :  { %1212 = vsyncpa [#allocation6], 1 }
 0x3d2   :  { %1213 = vsyncpa [#allocation4], 1 }
 0x3d3   :  { %1215 = vsyncpa [#allocation4 + $0x1], 1 }

</bundles_post_ra>
